<compile_context>
chip_gen: v6e
topology: v6e:2x2x1
jax: 0.10.0
libtpu: 0.0.40
codegen_flags: <defaults>
</compile_context>

<pallas_src>
import jax
import jax.numpy as jnp
from jax.experimental import pallas as pl
from jax.experimental.pallas import tpu as pltpu

# ---------------- model hyper-parameters (small, consistent with the module) ---
DATA_DIM = 256
NUM_CLASS = 8
ENCODER_DIM = [128, 64]
LATENT_DIM = 32
DECODER_DIM = [64, 128]
SIGMA = 0.1
BATCH = 8
PACK_LANES = 128       # lane-dense packed output slab: [logits | feat_norm | zeros]
MAX_TB = 256           # batch tile; 128 can be slightly better on v5e (4x128^2 MXU)


def _round_up(n, m):
    return ((n + m - 1) // m) * m


def zinb_kernel(
    # batch-tiled inputs
    x_ref, noise_ref,
    # encoder (3 Linear), bf16 weights / f32 biases
    ew0_ref, eb0_ref, ew1_ref, eb1_ref, ew2_ref, eb2_ref,
    # decoder first Linear (second Linear folded into the head)
    dw0_ref, db0_ref,
    # fused + folded mu|disp|pi head:  (DECODER_DIM[0], 3*DATA_DIM)
    hw_ref, hb_ref,
    # packed classifier [classifier | I | 0] (f32, exact feat pass-through)
    cw_ref, cb_ref,
    # batch-tiled outputs
    packed_ref, mean_ref, disp_ref, pi_ref,
):
    x = x_ref[...]
    noise = noise_ref[...]

    def lin_bf16(h, w_ref, b_ref):
        # bf16 MXU matmul, f32 accumulation, f32 bias-add
        return jnp.dot(h.astype(jnp.bfloat16), w_ref[...],
                       preferred_element_type=jnp.float32) + b_ref[...]

    def encode(h):
        h = jax.nn.relu(lin_bf16(h, ew0_ref, eb0_ref))
        h = jax.nn.relu(lin_bf16(h, ew1_ref, eb1_ref))
        return lin_bf16(h, ew2_ref, eb2_ref)            # (TB, LATENT_DIM)

    # --- noisy branch: encoder -> decoder(layer 0) -> folded ZINB head ---------
    z = encode(x + noise * SIGMA)
    d0 = jax.nn.relu(lin_bf16(z, dw0_ref, db0_ref))      # (TB, DECODER_DIM[0])
    heads = lin_bf16(d0, hw_ref, hb_ref)                 # (TB, 3*DATA_DIM)

    # TODO(synk): muDec/dispDec are not defined in the source snippet; using the
    # standard ZINB activations (MeanAct = clamp(exp, 1e-5, 1e6),
    # DispAct = clamp(softplus, 1e-4, 1e4)) from scDeepCluster-style code.
    mean_ref[...] = jnp.clip(jnp.exp(heads[:, 0:DATA_DIM]), 1e-5, 1e6)
    disp_ref[...] = jnp.clip(jax.nn.softplus(heads[:, DATA_DIM:2 * DATA_DIM]),
                             1e-4, 1e4)
    pi_ref[...] = jax.nn.sigmoid(heads[:, 2 * DATA_DIM:3 * DATA_DIM])

    # --- clean branch: encoder -> L2-normalize (dim=1) -> packed classifier ----
    feat = encode(x)
    sq_norm = jnp.sum(feat * feat, axis=1, keepdims=True)
    # F.normalize(p=2, dim=1): x / max(||x||, 1e-12)  ==  x * rsqrt(max(||x||^2, 1e-24))
    feat_n = feat * jax.lax.rsqrt(jnp.maximum(sq_norm, 1e-24))
    # f32 matmul against packed weight [classifier | I | 0]:
    #   lanes [0, NUM_CLASS)                    -> logits
    #   lanes [NUM_CLASS, NUM_CLASS+LATENT_DIM) -> feat_n pass-through (exact)
    packed_ref[...] = jnp.dot(feat_n, cw_ref[...],
                              preferred_element_type=jnp.float32) + cb_ref[...]


def init_params(key):
    """Deterministic parameter init (uniform ~ 1/sqrt(fan_in), like PyTorch Linear)."""
    def linear_params(k, fan_in, fan_out):
        kw, kb = jax.random.split(k)
        bound = 1.0 / jnp.sqrt(jnp.float32(fan_in))
        w = jax.random.uniform(kw, (fan_in, fan_out), jnp.float32, -bound, bound)
        b = jax.random.uniform(kb, (1, fan_out), jnp.float32, -bound, bound)
        return w, b

    enc_layers = [DATA_DIM] + ENCODER_DIM + [LATENT_DIM]   # 256 -> 128 -> 64 -> 32
    dec_layers = [LATENT_DIM] + DECODER_DIM                # 32 -> 64 -> 128

    keys = jax.random.split(key, 10)
    params = []
    for i in range(len(enc_layers) - 1):                   # encoder
        params += list(linear_params(keys[i], enc_layers[i], enc_layers[i + 1]))
    for i in range(len(dec_layers) - 1):                   # decoder
        params += list(linear_params(keys[3 + i], dec_layers[i], dec_layers[i + 1]))
    params += list(linear_params(keys[5], LATENT_DIM, NUM_CLASS))       # classifier
    params += list(linear_params(keys[6], DECODER_DIM[-1], DATA_DIM))   # mu head
    params += list(linear_params(keys[7], DECODER_DIM[-1], DATA_DIM))   # disp head
    params += list(linear_params(keys[8], DECODER_DIM[-1], DATA_DIM))   # pi head
    return params


def pack_params(params):
    """Pre-pack / fold / cast weights for the fused kernel (once, outside the hot path)."""
    (ew0, eb0, ew1, eb1, ew2, eb2,
     dw0, db0, dw1, db1,
     cw, cb, mw, mb, sw, sb, pw, pb) = params

    bf16 = lambda w: w.astype(jnp.bfloat16)

    # fused mu|disp|pi head: (DECODER_DIM[-1], 3*DATA_DIM)
    hw = jnp.concatenate([mw, sw, pw], axis=1)
    hb = jnp.concatenate([mb, sb, pb], axis=1)
    # Fold the decoder's last Linear (no activation after it in buildNetwork):
    #   heads = (d0 @ dw1 + db1) @ hw + hb = d0 @ (dw1 @ hw) + (db1 @ hw + hb)
    hw_fold = dw1 @ hw                     # (DECODER_DIM[0], 3*DATA_DIM), f32 fold
    hb_fold = db1 @ hw + hb                # (1, 3*DATA_DIM)

    # packed classifier: lanes [0:NUM_CLASS] = classifier,
    # lanes [NUM_CLASS:NUM_CLASS+LATENT_DIM] = identity (feat pass-through), rest 0.
    cw_pack = jnp.zeros((LATENT_DIM, PACK_LANES), jnp.float32)
    cw_pack = cw_pack.at[:, :NUM_CLASS].set(cw)
    cw_pack = cw_pack.at[:, NUM_CLASS:NUM_CLASS + LATENT_DIM].set(
        jnp.eye(LATENT_DIM, dtype=jnp.float32))
    cb_pack = jnp.zeros((1, PACK_LANES), jnp.float32).at[:, :NUM_CLASS].set(cb)

    return (bf16(ew0), eb0, bf16(ew1), eb1, bf16(ew2), eb2,
            bf16(dw0), db0,
            bf16(hw_fold), hb_fold,
            cw_pack, cb_pack)


@jax.jit
def zinb_forward(x, noise, *packed_params):
    B, D = x.shape
    assert D == DATA_DIM

    # Batch tile: sublane-aligned, capped at MAX_TB; pad the batch to a multiple.
    TB = min(MAX_TB, _round_up(B, 8))
    Bp = _round_up(B, TB)
    if Bp != B:
        x = jnp.pad(x, ((0, Bp - B), (0, 0)))
        noise = jnp.pad(noise, ((0, Bp - B), (0, 0)))
    grid = (Bp // TB,)

    batch_in_spec = pl.BlockSpec((TB, DATA_DIM), lambda i: (i, 0))
    # Constant index_map -> parameters fetched once, stay VMEM-resident across tiles.
    weight_specs = [pl.BlockSpec(p.shape, lambda i: (0, 0)) for p in packed_params]

    out_shape = (
        jax.ShapeDtypeStruct((Bp, PACK_LANES), jnp.float32),  # [logits | feat_norm | 0]
        jax.ShapeDtypeStruct((Bp, DATA_DIM), jnp.float32),    # mean
        jax.ShapeDtypeStruct((Bp, DATA_DIM), jnp.float32),    # disp
        jax.ShapeDtypeStruct((Bp, DATA_DIM), jnp.float32),    # pi
    )
    out_specs = (
        pl.BlockSpec((TB, PACK_LANES), lambda i: (i, 0)),
        pl.BlockSpec((TB, DATA_DIM), lambda i: (i, 0)),
        pl.BlockSpec((TB, DATA_DIM), lambda i: (i, 0)),
        pl.BlockSpec((TB, DATA_DIM), lambda i: (i, 0)),
    )

    packed, mean, disp, pi = pl.pallas_call(
        zinb_kernel,
        out_shape=out_shape,
        grid=grid,
        in_specs=[batch_in_spec, batch_in_spec] + weight_specs,
        out_specs=out_specs,
        compiler_params=pltpu.CompilerParams(
            dimension_semantics=("parallel",),   # v7x: batch tiles across both TCs
            vmem_limit_bytes=32 << 20,
        ),
    )(x, noise, *packed_params)

    logits = packed[:B, :NUM_CLASS]
    feat_norm = packed[:B, NUM_CLASS:NUM_CLASS + LATENT_DIM]
    return logits, feat_norm, {"mean": mean[:B], "disp": disp[:B], "pi": pi[:B]}


if __name__ == "__main__":
    key = jax.random.PRNGKey(0)
    k_param, k_x, k_noise = jax.random.split(key, 3)

    params = init_params(k_param)
    packed_params = pack_params(params)

    x = jax.random.uniform(k_x, (BATCH, DATA_DIM), jnp.float32, 0.0, 4.0)
    # torch.randn_like(x) equivalent, generated deterministically in the wrapper
    noise = jax.random.normal(k_noise, (BATCH, DATA_DIM), jnp.float32)

    logits, feat_norm, zinb = zinb_forward(x, noise, *packed_params)
    jax.block_until_ready((logits, feat_norm, zinb))

    assert logits.shape == (BATCH, NUM_CLASS)
    assert feat_norm.shape == (BATCH, LATENT_DIM)
    assert zinb["mean"].shape == (BATCH, DATA_DIM)
    assert zinb["disp"].shape == (BATCH, DATA_DIM)
    assert zinb["pi"].shape == (BATCH, DATA_DIM)
    # feat_norm rows should be unit L2 norm (f32 normalize + exact f32 pass-through)
    norms = jnp.sqrt(jnp.sum(feat_norm * feat_norm, axis=1))
    assert jnp.allclose(norms, 1.0, atol=1e-4), norms
    # ZINB head ranges
    assert jnp.all(zinb["mean"] >= 1e-5) and jnp.all(zinb["mean"] <= 1e6)
    assert jnp.all(zinb["disp"] >= 1e-4) and jnp.all(zinb["disp"] <= 1e4)
    assert jnp.all(zinb["pi"] >= 0.0) and jnp.all(zinb["pi"] <= 1.0)

    print("KERNEL_OK")
</pallas_src>

<mosaic_0001>
module attributes {stable_mosaic.version = 11 : i64} {
  func.func @zinb_kernel(%arg0: i32, %arg1: memref<8x256xf32, #tpu.memory_space<vmem>>, %arg2: memref<8x256xf32, #tpu.memory_space<vmem>>, %arg3: memref<256x128xbf16, #tpu.memory_space<vmem>>, %arg4: memref<1x128xf32, #tpu.memory_space<vmem>>, %arg5: memref<128x64xbf16, #tpu.memory_space<vmem>>, %arg6: memref<1x64xf32, #tpu.memory_space<vmem>>, %arg7: memref<64x32xbf16, #tpu.memory_space<vmem>>, %arg8: memref<1x32xf32, #tpu.memory_space<vmem>>, %arg9: memref<32x64xbf16, #tpu.memory_space<vmem>>, %arg10: memref<1x64xf32, #tpu.memory_space<vmem>>, %arg11: memref<64x768xbf16, #tpu.memory_space<vmem>>, %arg12: memref<1x768xf32, #tpu.memory_space<vmem>>, %arg13: memref<32x128xf32, #tpu.memory_space<vmem>>, %arg14: memref<1x128xf32, #tpu.memory_space<vmem>>, %arg15: memref<8x128xf32, #tpu.memory_space<vmem>>, %arg16: memref<8x256xf32, #tpu.memory_space<vmem>>, %arg17: memref<8x256xf32, #tpu.memory_space<vmem>>, %arg18: memref<8x256xf32, #tpu.memory_space<vmem>>) attributes {dimension_semantics = [#tpu.dimension_semantics<parallel>], iteration_bounds = array<i64: 1>, scalar_prefetch = 0 : i64, scratch_operands = 0 : i64, tpu.core_type = #tpu.core_type<tc>, window_params = [{transform_indices = @transform_0, window_bounds = array<i64: 8, 256>}, {transform_indices = @transform_1, window_bounds = array<i64: 8, 256>}, {pipeline_mode = #tpu.pipeline_mode<synchronous>, transform_indices = @transform_2, window_bounds = array<i64: 256, 128>}, {pipeline_mode = #tpu.pipeline_mode<synchronous>, transform_indices = @transform_3, window_bounds = array<i64: 1, 128>}, {pipeline_mode = #tpu.pipeline_mode<synchronous>, transform_indices = @transform_4, window_bounds = array<i64: 128, 64>}, {pipeline_mode = #tpu.pipeline_mode<synchronous>, transform_indices = @transform_5, window_bounds = array<i64: 1, 64>}, {pipeline_mode = #tpu.pipeline_mode<synchronous>, transform_indices = @transform_6, window_bounds = array<i64: 64, 32>}, {pipeline_mode = #tpu.pipeline_mode<synchronous>, transform_indices = @transform_7, window_bounds = array<i64: 1, 32>}, {pipeline_mode = #tpu.pipeline_mode<synchronous>, transform_indices = @transform_8, window_bounds = array<i64: 32, 64>}, {pipeline_mode = #tpu.pipeline_mode<synchronous>, transform_indices = @transform_9, window_bounds = array<i64: 1, 64>}, {pipeline_mode = #tpu.pipeline_mode<synchronous>, transform_indices = @transform_10, window_bounds = array<i64: 64, 768>}, {pipeline_mode = #tpu.pipeline_mode<synchronous>, transform_indices = @transform_11, window_bounds = array<i64: 1, 768>}, {pipeline_mode = #tpu.pipeline_mode<synchronous>, transform_indices = @transform_12, window_bounds = array<i64: 32, 128>}, {pipeline_mode = #tpu.pipeline_mode<synchronous>, transform_indices = @transform_13, window_bounds = array<i64: 1, 128>}, {transform_indices = @transform_14, window_bounds = array<i64: 8, 128>}, {transform_indices = @transform_15, window_bounds = array<i64: 8, 256>}, {transform_indices = @transform_16, window_bounds = array<i64: 8, 256>}, {transform_indices = @transform_17, window_bounds = array<i64: 8, 256>}]} {
    %c0 = arith.constant 0 : index
    %c0_0 = arith.constant 0 : index
    %0 = vector.load %arg1[%c0, %c0_0] : memref<8x256xf32, #tpu.memory_space<vmem>>, vector<8x256xf32>
    %c0_1 = arith.constant 0 : index
    %c0_2 = arith.constant 0 : index
    %1 = vector.load %arg2[%c0_1, %c0_2] : memref<8x256xf32, #tpu.memory_space<vmem>>, vector<8x256xf32>
    %cst = arith.constant 1.000000e-01 : f32
    %2 = vector.broadcast %cst : f32 to vector<8x256xf32>
    %3 = arith.mulf %1, %2 : vector<8x256xf32>
    %4 = arith.addf %0, %3 : vector<8x256xf32>
    %5 = arith.truncf %4 : vector<8x256xf32> to vector<8x256xbf16>
    %c0_3 = arith.constant 0 : index
    %c0_4 = arith.constant 0 : index
    %6 = vector.load %arg3[%c0_3, %c0_4] : memref<256x128xbf16, #tpu.memory_space<vmem>>, vector<256x128xbf16>
    %cst_5 = arith.constant dense<0.000000e+00> : vector<8x128xf32>
    %7 = tpu.matmul %5, %6, %cst_5 {dimension_numbers = #tpu.dot_dimension_numbers<[1], [0], [0], [1], [0, 0, 1, 1], [], []>} : vector<8x256xbf16>, vector<256x128xbf16>, vector<8x128xf32> -> vector<8x128xf32>
    %c0_6 = arith.constant 0 : index
    %c0_7 = arith.constant 0 : index
    %8 = vector.load %arg4[%c0_6, %c0_7] : memref<1x128xf32, #tpu.memory_space<vmem>>, vector<1x128xf32>
    %9 = vector.broadcast %8 : vector<1x128xf32> to vector<8x128xf32>
    %10 = arith.addf %7, %9 : vector<8x128xf32>
    %cst_8 = arith.constant 0.000000e+00 : f32
    %11 = vector.broadcast %cst_8 : f32 to vector<8x128xf32>
    %12 = arith.maximumf %10, %11 : vector<8x128xf32>
    %13 = arith.truncf %12 : vector<8x128xf32> to vector<8x128xbf16>
    %c0_9 = arith.constant 0 : index
    %c0_10 = arith.constant 0 : index
    %14 = vector.load %arg5[%c0_9, %c0_10] : memref<128x64xbf16, #tpu.memory_space<vmem>>, vector<128x64xbf16>
    %cst_11 = arith.constant dense<0.000000e+00> : vector<8x64xf32>
    %15 = tpu.matmul %13, %14, %cst_11 {dimension_numbers = #tpu.dot_dimension_numbers<[1], [0], [0], [1], [0, 0, 1, 1], [], []>} : vector<8x128xbf16>, vector<128x64xbf16>, vector<8x64xf32> -> vector<8x64xf32>
    %c0_12 = arith.constant 0 : index
    %c0_13 = arith.constant 0 : index
    %16 = vector.load %arg6[%c0_12, %c0_13] : memref<1x64xf32, #tpu.memory_space<vmem>>, vector<1x64xf32>
    %17 = vector.broadcast %16 : vector<1x64xf32> to vector<8x64xf32>
    %18 = arith.addf %15, %17 : vector<8x64xf32>
    %cst_14 = arith.constant 0.000000e+00 : f32
    %19 = vector.broadcast %cst_14 : f32 to vector<8x64xf32>
    %20 = arith.maximumf %18, %19 : vector<8x64xf32>
    %21 = arith.truncf %20 : vector<8x64xf32> to vector<8x64xbf16>
    %c0_15 = arith.constant 0 : index
    %c0_16 = arith.constant 0 : index
    %22 = vector.load %arg7[%c0_15, %c0_16] : memref<64x32xbf16, #tpu.memory_space<vmem>>, vector<64x32xbf16>
    %cst_17 = arith.constant dense<0.000000e+00> : vector<8x32xf32>
    %23 = tpu.matmul %21, %22, %cst_17 {dimension_numbers = #tpu.dot_dimension_numbers<[1], [0], [0], [1], [0, 0, 1, 1], [], []>} : vector<8x64xbf16>, vector<64x32xbf16>, vector<8x32xf32> -> vector<8x32xf32>
    %c0_18 = arith.constant 0 : index
    %c0_19 = arith.constant 0 : index
    %24 = vector.load %arg8[%c0_18, %c0_19] : memref<1x32xf32, #tpu.memory_space<vmem>>, vector<1x32xf32>
    %25 = vector.broadcast %24 : vector<1x32xf32> to vector<8x32xf32>
    %26 = arith.addf %23, %25 : vector<8x32xf32>
    %27 = arith.truncf %26 : vector<8x32xf32> to vector<8x32xbf16>
    %c0_20 = arith.constant 0 : index
    %c0_21 = arith.constant 0 : index
    %28 = vector.load %arg9[%c0_20, %c0_21] : memref<32x64xbf16, #tpu.memory_space<vmem>>, vector<32x64xbf16>
    %cst_22 = arith.constant dense<0.000000e+00> : vector<8x64xf32>
    %29 = tpu.matmul %27, %28, %cst_22 {dimension_numbers = #tpu.dot_dimension_numbers<[1], [0], [0], [1], [0, 0, 1, 1], [], []>} : vector<8x32xbf16>, vector<32x64xbf16>, vector<8x64xf32> -> vector<8x64xf32>
    %c0_23 = arith.constant 0 : index
    %c0_24 = arith.constant 0 : index
    %30 = vector.load %arg10[%c0_23, %c0_24] : memref<1x64xf32, #tpu.memory_space<vmem>>, vector<1x64xf32>
    %31 = vector.broadcast %30 : vector<1x64xf32> to vector<8x64xf32>
    %32 = arith.addf %29, %31 : vector<8x64xf32>
    %cst_25 = arith.constant 0.000000e+00 : f32
    %33 = vector.broadcast %cst_25 : f32 to vector<8x64xf32>
    %34 = arith.maximumf %32, %33 : vector<8x64xf32>
    %35 = arith.truncf %34 : vector<8x64xf32> to vector<8x64xbf16>
    %c0_26 = arith.constant 0 : index
    %c0_27 = arith.constant 0 : index
    %36 = vector.load %arg11[%c0_26, %c0_27] : memref<64x768xbf16, #tpu.memory_space<vmem>>, vector<64x768xbf16>
    %cst_28 = arith.constant dense<0.000000e+00> : vector<8x768xf32>
    %37 = tpu.matmul %35, %36, %cst_28 {dimension_numbers = #tpu.dot_dimension_numbers<[1], [0], [0], [1], [0, 0, 1, 1], [], []>} : vector<8x64xbf16>, vector<64x768xbf16>, vector<8x768xf32> -> vector<8x768xf32>
    %c0_29 = arith.constant 0 : index
    %c0_30 = arith.constant 0 : index
    %38 = vector.load %arg12[%c0_29, %c0_30] : memref<1x768xf32, #tpu.memory_space<vmem>>, vector<1x768xf32>
    %39 = vector.broadcast %38 : vector<1x768xf32> to vector<8x768xf32>
    %40 = arith.addf %37, %39 : vector<8x768xf32>
    %41 = vector.extract_strided_slice %40 {offsets = [0, 0], sizes = [8, 256], strides = [1, 1]} : vector<8x768xf32> to vector<8x256xf32>
    %42 = math.exp %41 : vector<8x256xf32>
    %cst_31 = arith.constant 9.99999974E-6 : f32
    %cst_32 = arith.constant 1.000000e+06 : f32
    %43 = vector.broadcast %cst_31 : f32 to vector<8x256xf32>
    %44 = arith.maximumf %43, %42 : vector<8x256xf32>
    %45 = vector.broadcast %cst_32 : f32 to vector<8x256xf32>
    %46 = arith.minimumf %45, %44 : vector<8x256xf32>
    %c0_33 = arith.constant 0 : index
    %c0_34 = arith.constant 0 : index
    %47 = vector.load %arg16[%c0_33, %c0_34] : memref<8x256xf32, #tpu.memory_space<vmem>>, vector<8x256xf32>
    tpu.vector_store %arg16[%c0_33, %c0_34], %46 {strides = array<i32>} : memref<8x256xf32, #tpu.memory_space<vmem>>, vector<8x256xf32>,
    %48 = vector.extract_strided_slice %40 {offsets = [0, 256], sizes = [8, 256], strides = [1, 1]} : vector<8x768xf32> to vector<8x256xf32>
    %cst_35 = arith.constant 0.000000e+00 : f32
    %49 = vector.broadcast %cst_35 : f32 to vector<8x256xf32>
    %50 = arith.maximumf %48, %49 : vector<8x256xf32>
    %51 = vector.broadcast %cst_35 : f32 to vector<8x256xf32>
    %52 = arith.subf %48, %51 : vector<8x256xf32>
    %53 = arith.cmpf one, %52, %52 : vector<8x256xf32>
    %54 = vector.broadcast %cst_35 : f32 to vector<8x256xf32>
    %55 = arith.addf %48, %54 : vector<8x256xf32>
    %56 = math.absf %52 : vector<8x256xf32>
    %cst_36 = arith.constant 0.000000e+00 : f32
    %57 = vector.broadcast %cst_36 : f32 to vector<8x256xf32>
    %58 = arith.subf %57, %56 : vector<8x256xf32>
    %59 = math.exp %58 : vector<8x256xf32>
    %60 = math.log1p %59 : vector<8x256xf32>
    %61 = arith.addf %50, %60 : vector<8x256xf32>
    %62 = arith.select %53, %55, %61 : vector<8x256xi1>, vector<8x256xf32>
    %cst_37 = arith.constant 9.99999974E-5 : f32
    %cst_38 = arith.constant 1.000000e+04 : f32
    %63 = vector.broadcast %cst_37 : f32 to vector<8x256xf32>
    %64 = arith.maximumf %63, %62 : vector<8x256xf32>
    %65 = vector.broadcast %cst_38 : f32 to vector<8x256xf32>
    %66 = arith.minimumf %65, %64 : vector<8x256xf32>
    %c0_39 = arith.constant 0 : index
    %c0_40 = arith.constant 0 : index
    %67 = vector.load %arg17[%c0_39, %c0_40] : memref<8x256xf32, #tpu.memory_space<vmem>>, vector<8x256xf32>
    tpu.vector_store %arg17[%c0_39, %c0_40], %66 {strides = array<i32>} : memref<8x256xf32, #tpu.memory_space<vmem>>, vector<8x256xf32>,
    %68 = vector.extract_strided_slice %40 {offsets = [0, 512], sizes = [8, 256], strides = [1, 1]} : vector<8x768xf32> to vector<8x256xf32>
    %69 = arith.negf %68 : vector<8x256xf32>
    %70 = math.exp %69 : vector<8x256xf32>
    %cst_41 = arith.constant 1.000000e+00 : f32
    %71 = vector.broadcast %cst_41 : f32 to vector<8x256xf32>
    %72 = arith.addf %71, %70 : vector<8x256xf32>
    %73 = arith.divf %71, %72 : vector<8x256xf32>
    %c0_42 = arith.constant 0 : index
    %c0_43 = arith.constant 0 : index
    %74 = vector.load %arg18[%c0_42, %c0_43] : memref<8x256xf32, #tpu.memory_space<vmem>>, vector<8x256xf32>
    tpu.vector_store %arg18[%c0_42, %c0_43], %73 {strides = array<i32>} : memref<8x256xf32, #tpu.memory_space<vmem>>, vector<8x256xf32>,
    %75 = arith.truncf %0 : vector<8x256xf32> to vector<8x256xbf16>
    %c0_44 = arith.constant 0 : index
    %c0_45 = arith.constant 0 : index
    %76 = vector.load %arg3[%c0_44, %c0_45] : memref<256x128xbf16, #tpu.memory_space<vmem>>, vector<256x128xbf16>
    %cst_46 = arith.constant dense<0.000000e+00> : vector<8x128xf32>
    %77 = tpu.matmul %75, %76, %cst_46 {dimension_numbers = #tpu.dot_dimension_numbers<[1], [0], [0], [1], [0, 0, 1, 1], [], []>} : vector<8x256xbf16>, vector<256x128xbf16>, vector<8x128xf32> -> vector<8x128xf32>
    %c0_47 = arith.constant 0 : index
    %c0_48 = arith.constant 0 : index
    %78 = vector.load %arg4[%c0_47, %c0_48] : memref<1x128xf32, #tpu.memory_space<vmem>>, vector<1x128xf32>
    %79 = vector.broadcast %78 : vector<1x128xf32> to vector<8x128xf32>
    %80 = arith.addf %77, %79 : vector<8x128xf32>
    %cst_49 = arith.constant 0.000000e+00 : f32
    %81 = vector.broadcast %cst_49 : f32 to vector<8x128xf32>
    %82 = arith.maximumf %80, %81 : vector<8x128xf32>
    %83 = arith.truncf %82 : vector<8x128xf32> to vector<8x128xbf16>
    %c0_50 = arith.constant 0 : index
    %c0_51 = arith.constant 0 : index
    %84 = vector.load %arg5[%c0_50, %c0_51] : memref<128x64xbf16, #tpu.memory_space<vmem>>, vector<128x64xbf16>
    %cst_52 = arith.constant dense<0.000000e+00> : vector<8x64xf32>
    %85 = tpu.matmul %83, %84, %cst_52 {dimension_numbers = #tpu.dot_dimension_numbers<[1], [0], [0], [1], [0, 0, 1, 1], [], []>} : vector<8x128xbf16>, vector<128x64xbf16>, vector<8x64xf32> -> vector<8x64xf32>
    %c0_53 = arith.constant 0 : index
    %c0_54 = arith.constant 0 : index
    %86 = vector.load %arg6[%c0_53, %c0_54] : memref<1x64xf32, #tpu.memory_space<vmem>>, vector<1x64xf32>
    %87 = vector.broadcast %86 : vector<1x64xf32> to vector<8x64xf32>
    %88 = arith.addf %85, %87 : vector<8x64xf32>
    %cst_55 = arith.constant 0.000000e+00 : f32
    %89 = vector.broadcast %cst_55 : f32 to vector<8x64xf32>
    %90 = arith.maximumf %88, %89 : vector<8x64xf32>
    %91 = arith.truncf %90 : vector<8x64xf32> to vector<8x64xbf16>
    %c0_56 = arith.constant 0 : index
    %c0_57 = arith.constant 0 : index
    %92 = vector.load %arg7[%c0_56, %c0_57] : memref<64x32xbf16, #tpu.memory_space<vmem>>, vector<64x32xbf16>
    %cst_58 = arith.constant dense<0.000000e+00> : vector<8x32xf32>
    %93 = tpu.matmul %91, %92, %cst_58 {dimension_numbers = #tpu.dot_dimension_numbers<[1], [0], [0], [1], [0, 0, 1, 1], [], []>} : vector<8x64xbf16>, vector<64x32xbf16>, vector<8x32xf32> -> vector<8x32xf32>
    %c0_59 = arith.constant 0 : index
    %c0_60 = arith.constant 0 : index
    %94 = vector.load %arg8[%c0_59, %c0_60] : memref<1x32xf32, #tpu.memory_space<vmem>>, vector<1x32xf32>
    %95 = vector.broadcast %94 : vector<1x32xf32> to vector<8x32xf32>
    %96 = arith.addf %93, %95 : vector<8x32xf32>
    %97 = arith.mulf %96, %96 : vector<8x32xf32>
    %cst_61 = arith.constant dense<0.000000e+00> : vector<8xf32>
    %98 = vector.multi_reduction <add>, %97, %cst_61 [1] : vector<8x32xf32> to vector<8xf32>
    %99 = vector.shape_cast %98 : vector<8xf32> to vector<8x1xf32>
    %cst_62 = arith.constant 1.000000e-24 : f32
    %100 = vector.broadcast %cst_62 : f32 to vector<8x1xf32>
    %101 = arith.maximumf %99, %100 : vector<8x1xf32>
    %102 = math.rsqrt %101 : vector<8x1xf32>
    %103 = vector.broadcast %102 : vector<8x1xf32> to vector<8x32xf32>
    %104 = arith.mulf %96, %103 : vector<8x32xf32>
    %c0_63 = arith.constant 0 : index
    %c0_64 = arith.constant 0 : index
    %105 = vector.load %arg13[%c0_63, %c0_64] : memref<32x128xf32, #tpu.memory_space<vmem>>, vector<32x128xf32>
    %cst_65 = arith.constant dense<0.000000e+00> : vector<8x128xf32>
    %106 = tpu.matmul %104, %105, %cst_65 {dimension_numbers = #tpu.dot_dimension_numbers<[1], [0], [0], [1], [0, 0, 1, 1], [], []>} : vector<8x32xf32>, vector<32x128xf32>, vector<8x128xf32> -> vector<8x128xf32>
    %c0_66 = arith.constant 0 : index
    %c0_67 = arith.constant 0 : index
    %107 = vector.load %arg14[%c0_66, %c0_67] : memref<1x128xf32, #tpu.memory_space<vmem>>, vector<1x128xf32>
    %108 = vector.broadcast %107 : vector<1x128xf32> to vector<8x128xf32>
    %109 = arith.addf %106, %108 : vector<8x128xf32>
    %c0_68 = arith.constant 0 : index
    %c0_69 = arith.constant 0 : index
    %110 = vector.load %arg15[%c0_68, %c0_69] : memref<8x128xf32, #tpu.memory_space<vmem>>, vector<8x128xf32>
    tpu.vector_store %arg15[%c0_68, %c0_69], %109 {strides = array<i32>} : memref<8x128xf32, #tpu.memory_space<vmem>>, vector<8x128xf32>,
    return
  }
  func.func @transform_0(%arg0: i32) -> (i32, i32) {
    %c0_i32 = arith.constant 0 : i32
    %c0_i32_0 = arith.constant 0 : i32
    return %arg0, %c0_i32 : i32, i32
  }
  func.func @transform_1(%arg0: i32) -> (i32, i32) {
    %c0_i32 = arith.constant 0 : i32
    %c0_i32_0 = arith.constant 0 : i32
    return %arg0, %c0_i32 : i32, i32
  }
  func.func @transform_2(%arg0: i32) -> (i32, i32) {
    %c0_i32 = arith.constant 0 : i32
    %c0_i32_0 = arith.constant 0 : i32
    %c0_i32_1 = arith.constant 0 : i32
    return %c0_i32, %c0_i32_0 : i32, i32
  }
  func.func @transform_3(%arg0: i32) -> (i32, i32) {
    %c0_i32 = arith.constant 0 : i32
    %c0_i32_0 = arith.constant 0 : i32
    %c0_i32_1 = arith.constant 0 : i32
    return %c0_i32, %c0_i32_0 : i32, i32
  }
  func.func @transform_4(%arg0: i32) -> (i32, i32) {
    %c0_i32 = arith.constant 0 : i32
    %c0_i32_0 = arith.constant 0 : i32
    %c0_i32_1 = arith.constant 0 : i32
    return %c0_i32, %c0_i32_0 : i32, i32
  }
  func.func @transform_5(%arg0: i32) -> (i32, i32) {
    %c0_i32 = arith.constant 0 : i32
    %c0_i32_0 = arith.constant 0 : i32
    %c0_i32_1 = arith.constant 0 : i32
    return %c0_i32, %c0_i32_0 : i32, i32
  }
  func.func @transform_6(%arg0: i32) -> (i32, i32) {
    %c0_i32 = arith.constant 0 : i32
    %c0_i32_0 = arith.constant 0 : i32
    %c0_i32_1 = arith.constant 0 : i32
    return %c0_i32, %c0_i32_0 : i32, i32
  }
  func.func @transform_7(%arg0: i32) -> (i32, i32) {
    %c0_i32 = arith.constant 0 : i32
    %c0_i32_0 = arith.constant 0 : i32
    %c0_i32_1 = arith.constant 0 : i32
    return %c0_i32, %c0_i32_0 : i32, i32
  }
  func.func @transform_8(%arg0: i32) -> (i32, i32) {
    %c0_i32 = arith.constant 0 : i32
    %c0_i32_0 = arith.constant 0 : i32
    %c0_i32_1 = arith.constant 0 : i32
    return %c0_i32, %c0_i32_0 : i32, i32
  }
  func.func @transform_9(%arg0: i32) -> (i32, i32) {
    %c0_i32 = arith.constant 0 : i32
    %c0_i32_0 = arith.constant 0 : i32
    %c0_i32_1 = arith.constant 0 : i32
    return %c0_i32, %c0_i32_0 : i32, i32
  }
  func.func @transform_10(%arg0: i32) -> (i32, i32) {
    %c0_i32 = arith.constant 0 : i32
    %c0_i32_0 = arith.constant 0 : i32
    %c0_i32_1 = arith.constant 0 : i32
    return %c0_i32, %c0_i32_0 : i32, i32
  }
  func.func @transform_11(%arg0: i32) -> (i32, i32) {
    %c0_i32 = arith.constant 0 : i32
    %c0_i32_0 = arith.constant 0 : i32
    %c0_i32_1 = arith.constant 0 : i32
    return %c0_i32, %c0_i32_0 : i32, i32
  }
  func.func @transform_12(%arg0: i32) -> (i32, i32) {
    %c0_i32 = arith.constant 0 : i32
    %c0_i32_0 = arith.constant 0 : i32
    %c0_i32_1 = arith.constant 0 : i32
    return %c0_i32, %c0_i32_0 : i32, i32
  }
  func.func @transform_13(%arg0: i32) -> (i32, i32) {
    %c0_i32 = arith.constant 0 : i32
    %c0_i32_0 = arith.constant 0 : i32
    %c0_i32_1 = arith.constant 0 : i32
    return %c0_i32, %c0_i32_0 : i32, i32
  }
  func.func @transform_14(%arg0: i32) -> (i32, i32) {
    %c0_i32 = arith.constant 0 : i32
    %c0_i32_0 = arith.constant 0 : i32
    return %arg0, %c0_i32 : i32, i32
  }
  func.func @transform_15(%arg0: i32) -> (i32, i32) {
    %c0_i32 = arith.constant 0 : i32
    %c0_i32_0 = arith.constant 0 : i32
    return %arg0, %c0_i32 : i32, i32
  }
  func.func @transform_16(%arg0: i32) -> (i32, i32) {
    %c0_i32 = arith.constant 0 : i32
    %c0_i32_0 = arith.constant 0 : i32
    return %arg0, %c0_i32 : i32, i32
  }
  func.func @transform_17(%arg0: i32) -> (i32, i32) {
    %c0_i32 = arith.constant 0 : i32
    %c0_i32_0 = arith.constant 0 : i32
    return %arg0, %c0_i32 : i32, i32
  }
}

</mosaic_0001>

<bundles_post_ra>
// kernel: zinb_forward.1
= control target key start
LH: loop header
LB: loop body
LE: loop exit
PB: predicated region body
PF: predicated region fallthrough
CT: control target
= control target key end

     0   :  { %s2567_s0 = inlined_call_operand.hbm [shape: f32[8,256], index: 0, kind: input, shape index: {}]   ;;  %s2568_s1 = inlined_call_operand.hbm [shape: f32[8,256], index: 1, kind: input, shape index: {}]   ;;  %s2569_s2 = inlined_call_operand.vmem [shape: bf16[256,128], index: 2, kind: input, shape index: {}]   ;;  %s2570_s3 = inlined_call_operand.hbm [shape: f32[1,128], index: 3, kind: input, shape index: {}]   ;;  %s2571_s4 = inlined_call_operand.vmem [shape: bf16[128,64], index: 4, kind: input, shape index: {}]   ;;  %s2572_s5 = inlined_call_operand.hbm [shape: f32[1,64], index: 5, kind: input, shape index: {}]   ;;  %s2573_s6 = inlined_call_operand.vmem [shape: bf16[64,32], index: 6, kind: input, shape index: {}]   ;;  %s2574_s7 = inlined_call_operand.hbm [shape: f32[1,32], index: 7, kind: input, shape index: {}]   ;;  %s2575_s8 = inlined_call_operand.hbm [shape: bf16[32,64], index: 8, kind: input, shape index: {}]   ;;  %s2576_s9 = inlined_call_operand.hbm [shape: f32[1,64], index: 9, kind: input, shape index: {}]   ;;  %s2577_s10 = inlined_call_operand.hbm [shape: bf16[64,768], index: 10, kind: input, shape index: {}]   ;;  %s2578_s11 = inlined_call_operand.hbm [shape: f32[1,768], index: 11, kind: input, shape index: {}]   ;;  %s2579_s12 = inlined_call_operand.vmem [shape: f32[32,128], index: 12, kind: input, shape index: {}]   ;;  %s2580_s13 = inlined_call_operand.vmem [shape: f32[1,128], index: 13, kind: input, shape index: {}]   ;;  %s2581_s14 = inlined_call_operand.vmem [shape: f32[8,128], index: 14, kind: output, shape index: {0}]   ;;  %s2582_s15 = inlined_call_operand.hbm [shape: f32[8,256], index: 15, kind: output, shape index: {1}]   ;;  %s2583_s16 = inlined_call_operand.hbm [shape: f32[8,256], index: 16, kind: output, shape index: {2}]   ;;  %s2584_s17 = inlined_call_operand.hbm [shape: f32[8,256], index: 17, kind: output, shape index: {3}]  }
   0x1   :  { %2585 = sst [smem:[#allocation28_spill]] %s2567_s0 }
   0x2   :  { %2586 = sst [smem:[#allocation29_spill]] %s2568_s1 }
   0x3   :  { %23 = vsyncpa [#allocation3], 0 }
   0x4   :  { %24 = vsyncpa [#allocation6], 0 }
   0x5   :  { %25 = vsyncpa [#allocation9], 0 }
   0x6   :  { %26 = vsyncpa [#allocation12], 0 }
   0x7   :  { %27 = vsyncpa [#allocation15], 0 }
   0x8   :  { %28 = vsyncpa [#allocation4], 0 }
   0x9   :  { %29 = vsyncpa [#allocation19], 0  ;;  %s2150_s24 = smov [#allocation5]   ;;  %s2151_s26 = smov [#allocation8]  }
   0xa   :  { %s46_s25 = sshll.u32 %s2150_s24, 4  ;;  %s70_s27 = sshll.u32 %s2151_s26, 4  ;;  %s47_s25 = int_to_ptr.vmem [resolvable:$true] %s46_s25  ;;  %s71_s27 = int_to_ptr.vmem [resolvable:$true] %s70_s27 }
   0xb   :  { %s1904_s28 = scalar_lea.vmem %s47_s25, 256  ;;  %p1909_p1 = scmp.lt.s32.totalorder %s47_s25, %s47_s25 }
   0xc   :  { %p1905_p0 = scmp.ne.s32.totalorder %s47_s25, %s1904_s28  ;;  %p1910_p2 = scmp.lt.s32.totalorder %s1904_s28, %s1904_s28 }
   0xe   :  { %p1911_p3 = por %p1910_p2, %p1909_p1 }
  0x10   :  { %p1912_p4 = pnand %p1911_p3, %p1905_p0 }
  0x12   :  { %1915 = shalt.err (!%p1912_p4)
}
  0x13   :  { %s2587_s30 = sld [smem:[#allocation29_spill]]  ;;  %s1924_s18 = scalar_lea.vmem %s71_s27, 16 }
  0x14   :  { %p1925_p5 = scmp.ne.s32.totalorder %s71_s27, %s1924_s18  ;;  %s1928_s19 = scalar_lea.vmem %s71_s27, 32 }
  0x15   :  { %p1929_p6 = scmp.lt.s32.totalorder %s71_s27, %s71_s27  ;;  %p1930_p7 = scmp.lt.s32.totalorder %s1928_s19, %s1924_s18 }
  0x17   :  { %p1931_p8 = por %p1930_p7, %p1929_p6 }
  0x19   :  { %49 = dma.hbm_to_vmem [thread:$0]  %s2587_s30, 256, %s47_s25, [#allocation6]  }
  0x1a   :  { %p1932_p9 = pnand %p1931_p8, %p1925_p5 }
  0x1c   :  { %1935 = shalt.err (!%p1932_p9)
}
  0x1d   :  { %73 = dma.hbm_to_vmem [thread:$0]  %s2572_s5, 16, %s71_s27, [#allocation9]  }
  0x1e   :  { %s2152_s21 = smov [#allocation11]  }
  0x1f   :  { %s91_s22 = sshll.u32 %s2152_s21, 4  ;;  %s92_s22 = int_to_ptr.vmem [resolvable:$true] %s91_s22 }
  0x20   :  { %s1944_s23 = scalar_lea.vmem %s92_s22, 256  ;;  %p1949_p11 = scmp.lt.s32.totalorder %s92_s22, %s92_s22 }
  0x21   :  { %p1945_p10 = scmp.ne.s32.totalorder %s92_s22, %s1944_s23  ;;  %p1950_p12 = scmp.lt.s32.totalorder %s1944_s23, %s1944_s23 }
  0x23   :  { %p1951_p13 = por %p1950_p12, %p1949_p11 }
  0x25   :  { %p1952_p0 = pnand %p1951_p13, %p1945_p10 }
  0x27   :  { %1955 = shalt.err (!%p1952_p0)
}
  0x28   :  { %s2153_s24 = smov 64   ;;  %s2154_s25 = smov 4  }
  0x29   :  { %97 = dma.hbm_to_vmem [thread:$0]  %s2575_s8, 256, %s92_s22, [#allocation12], %s2153_s24, %s2153_s24, %s2154_s25  }
  0x2a   :  { %s2155_s29 = smov [#allocation14]  }
  0x2b   :  { %s113_s0 = sshll.u32 %s2155_s29, 4  ;;  %s114_s0 = int_to_ptr.vmem [resolvable:$true] %s113_s0 }
  0x2c   :  { %s1964_s5 = scalar_lea.vmem %s114_s0, 3072  ;;  %p1969_p2 = scmp.lt.s32.totalorder %s114_s0, %s114_s0 }
  0x2d   :  { %p1965_p1 = scmp.ne.s32.totalorder %s114_s0, %s1964_s5  ;;  %p1970_p3 = scmp.lt.s32.totalorder %s1964_s5, %s1964_s5 }
  0x2f   :  { %p1971_p4 = por %p1970_p3, %p1969_p2 }
  0x31   :  { %p1972_p5 = pnand %p1971_p4, %p1965_p1 }
  0x33   :  { %1975 = shalt.err (!%p1972_p5)
}
  0x34   :  { %s2156_s27 = smov 384   ;;  %s2157_s30 = smov 24  }
  0x35   :  { %119 = dma.hbm_to_vmem [thread:$0]  %s2577_s10, 3072, %s114_s0, [#allocation15], %s2156_s27, %s2156_s27, %s2157_s30  }
  0x36   :  { %s2158_s1 = smov [#allocation2]   ;;  %s2159_s21 = smov [#allocation7]  }
  0x37   :  { %s36_s20 = sshll.u32 %s2158_s1, 4  ;;  %s58_s8 = sshll.u32 %s2159_s21, 4  ;;  %s37_s20 = int_to_ptr.vmem [resolvable:$true] %s36_s20  ;;  %s59_s8 = int_to_ptr.vmem [resolvable:$true] %s58_s8 }
  0x38   :  { %s1984_s22 = scalar_lea.vmem %s37_s20, 256  ;;  %p1989_p7 = scmp.lt.s32.totalorder %s37_s20, %s37_s20 }
  0x39   :  { %p1985_p6 = scmp.ne.s32.totalorder %s37_s20, %s1984_s22  ;;  %p1990_p8 = scmp.lt.s32.totalorder %s1984_s22, %s1984_s22 }
  0x3b   :  { %p1991_p9 = por %p1990_p8, %p1989_p7 }
  0x3d   :  { %p1992_p10 = pnand %p1991_p9, %p1985_p6 }
  0x3f   :  { %1995 = shalt.err (!%p1992_p10)
}
  0x40   :  { %s2588_s25 = sld [smem:[#allocation28_spill]]  ;;  %s2004_s26 = scalar_lea.vmem %s59_s8, 16 }
  0x41   :  { %p2005_p11 = scmp.ne.s32.totalorder %s59_s8, %s2004_s26  ;;  %s2008_s10 = scalar_lea.vmem %s59_s8, 32 }
  0x42   :  { %p2009_p12 = scmp.lt.s32.totalorder %s59_s8, %s59_s8  ;;  %p2010_p13 = scmp.lt.s32.totalorder %s2008_s10, %s2004_s26 }
  0x44   :  { %p2011_p0 = por %p2010_p13, %p2009_p12 }
  0x46   :  { %39 = dma.hbm_to_vmem [thread:$0]  %s2588_s25, 256, %s37_s20, [#allocation3]  }
  0x47   :  { %p2012_p1 = pnand %p2011_p0, %p2005_p11 }
  0x49   :  { %2015 = shalt.err (!%p2012_p1)
}
  0x4a   :  { %61 = dma.hbm_to_vmem [thread:$0]  %s2570_s3, 16, %s59_s8, [#allocation6]  }
  0x4b   :  { %s2160_s0 = smov [#allocation10]   ;;  %s2161_s27 = smov [#allocation13]  }
  0x4c   :  { %s82_s5 = sshll.u32 %s2160_s0, 4  ;;  %s104_s30 = sshll.u32 %s2161_s27, 4  ;;  %s83_s5 = int_to_ptr.vmem [resolvable:$true] %s82_s5  ;;  %s105_s30 = int_to_ptr.vmem [resolvable:$true] %s104_s30 }
  0x4d   :  { %s2024_s18 = scalar_lea.vmem %s83_s5, 16  ;;  %s2028_s19 = scalar_lea.vmem %s83_s5, 32 }
  0x4e   :  { %p2025_p2 = scmp.ne.s32.totalorder %s83_s5, %s2024_s18  ;;  %p2029_p3 = scmp.lt.s32.totalorder %s83_s5, %s83_s5 }
  0x4f   :  { %p2030_p4 = scmp.lt.s32.totalorder %s2028_s19, %s2024_s18 }
  0x51   :  { %p2031_p5 = por %p2030_p4, %p2029_p3 }
  0x53   :  { %p2032_p6 = pnand %p2031_p5, %p2025_p2 }
  0x55   :  { %2035 = shalt.err (!%p2032_p6)
}
  0x56   :  { %85 = dma.hbm_to_vmem [thread:$0]  %s2574_s7, 16, %s83_s5, [#allocation9]  }
  0x57   :  { %s2044_s21 = scalar_lea.vmem %s105_s30, 16  ;;  %s2048_s3 = scalar_lea.vmem %s105_s30, 32 }
  0x58   :  { %p2045_p7 = scmp.ne.s32.totalorder %s105_s30, %s2044_s21  ;;  %p2049_p8 = scmp.lt.s32.totalorder %s105_s30, %s105_s30 }
  0x59   :  { %p2050_p9 = scmp.lt.s32.totalorder %s2048_s3, %s2044_s21 }
  0x5b   :  { %p2051_p10 = por %p2050_p9, %p2049_p8 }
  0x5d   :  { %p2052_p11 = pnand %p2051_p10, %p2045_p7 }
  0x5f   :  { %2055 = shalt.err (!%p2052_p11)
}
  0x60   :  { %107 = dma.hbm_to_vmem [thread:$0]  %s2576_s9, 16, %s105_s30, [#allocation12]  }
  0x61   :  { %s2162_s23 = smov [#allocation16]  }
  0x62   :  { %s126_s24 = sshll.u32 %s2162_s23, 4  ;;  %s127_s24 = int_to_ptr.vmem [resolvable:$true] %s126_s24 }
  0x63   :  { %s2064_s25 = scalar_lea.vmem %s127_s24, 96  ;;  %p2069_p13 = scmp.lt.s32.totalorder %s127_s24, %s127_s24 }
  0x64   :  { %p2065_p12 = scmp.ne.s32.totalorder %s127_s24, %s2064_s25  ;;  %p2070_p0 = scmp.lt.s32.totalorder %s2064_s25, %s2064_s25 }
  0x66   :  { %p2071_p1 = por %p2070_p0, %p2069_p13 }
  0x68   :  { %p2072_p2 = pnand %p2071_p1, %p2065_p12 }
  0x6a   :  { %2075 = shalt.err (!%p2072_p2)
}
  0x6b   :  { %129 = dma.hbm_to_vmem [thread:$0]  %s2578_s11, 96, %s127_s24, [#allocation15]  }
  0x6c   :  { %2136 = dma.done.wait [#allocation3], 256  }
  0x6d   :  { %2137 = vsyncadd [#allocation3], 4294967040 }
  0x6e   :  { %2138 = dma.done.wait [#allocation6], 272  }
  0x6f   :  { %2139 = vsyncadd [#allocation6], 4294967024 }
  0x70   :  { %2140 = dma.done.wait [#allocation9], 32  }
  0x71   :  { %2141 = vsyncadd [#allocation9], 4294967264 }
  0x72   :  { %2142 = dma.done.wait [#allocation12], 272  }
  0x73   :  { %2143 = vsyncadd [#allocation12], 4294967024 }
  0x74   :  { %2144 = dma.done.wait [#allocation15], 3168  }
  0x75   :  { %2145 = vsyncadd [#allocation15], 4294964128  ;;  %v2163_v0 = vmov 0.0   ;;  %v1780_v1 = vld [vmem:[%s2569_s2 + $0x78] sm:$0xff]   ;;  %v1782_v3 = vld [vmem:[%s2569_s2 + $0x70] sm:$0xff]   ;;  %vm2164_vm0 = vmmov 0  }
  0x76   :  { %1678 = vmatprep.subr.bf16.mxu1 %v2163_v0  ;;  %v1781_v2 = vld [vmem:[%s2569_s2 + $0x38] sm:$0xff]   ;;  %1598 = vmatprep.subr.bf16.mxu0 %v1780_v1  ;;  %v1783_v4 = vld [vmem:[%s2569_s2 + $0x30] sm:$0xff]   ;;  %v1784_v5 = vld [vmem:[%s2569_s2 + $0x68] sm:$0xff]   ;;  %vm501_vm1 = vcmask 523264   ;;  %vm569_vm2 = vcmask 261120   ;;  %s2166_s5 = smov [#allocation18]  }
  0x77   :  { %1599 = vmatpush3.bf16.msra.mxu0 %v1781_v2  ;;  %v1785_v6 = vld [vmem:[%s2569_s2 + $0x28] sm:$0xff]   ;;  %v1786_v7 = vld [vmem:[%s2569_s2 + $0x60] sm:$0xff]   ;;  %v1788_v9 = vld [vmem:[%s2569_s2 + $0x58] sm:$0xff]   ;;  %1694 = vmatprep.mubr.msk.bf16.mxu1 %vm2164_vm0, %v2163_v0  ;;  %s1467_s27 = sshll.u32 %s2166_s5, 4  ;;  %s2167_s30 = smov [#allocation17]   ;;  %s1468_s27 = int_to_ptr.vmem [resolvable:$true] %s1467_s27 }
  0x78   :  { %1600 = vmatprep.subr.bf16.mxu0 %v1782_v3  ;;  %v1787_v8 = vld [vmem:[%s2569_s2 + $0x20] sm:$0xff]   ;;  %v1789_v10 = vld [vmem:[%s2569_s2 + $0x18] sm:$0xff]   ;;  %v1790_v11 = vld [vmem:[%s2569_s2 + $0x50] sm:$0xff]   ;;  %s1457_s18 = sshll.u32 %s2167_s30, 4  ;;  %s2076_s19 = scalar_lea.vmem %s1468_s27, 256  ;;  %s1458_s18 = int_to_ptr.vmem [resolvable:$true] %s1457_s18 }
  0x79   :  { %v2320_v12 = vld [vmem:[#allocation2 + $0x8] sm:$0xff]  ;;  %v165_v13 = vld [vmem:[#allocation5 + $0x8] sm:$0xff]  ;;  %v1791_v14 = vld [vmem:[%s2569_s2 + $0x10] sm:$0xff]   ;;  %p2077_p3 = scmp.ne.s32.totalorder %s1468_s27, %s2076_s19  ;;  %p2081_p4 = scmp.lt.s32.totalorder %s1468_s27, %s1468_s27 }
  0x7a   :  { %v167_v15 = vmul.f32 0.1, %v165_v13  ;;  %v1796_v16 = vld [vmem:[%s2571_s4 + $0x38] sm:$0xff]   ;;  %v164_v17 = vld [vmem:[#allocation5] sm:$0xff]  ;;  %v1792_v18 = vld [vmem:[%s2569_s2 + $0x48] sm:$0xff]   ;;  %p2082_p5 = scmp.lt.s32.totalorder %s2076_s19, %s2076_s19 }
  0x7b   :  { %1601 = vmatpush3.bf16.msra.mxu0 %v1783_v4  ;;  %1679 = vmatpush3.bf16.msra.mxu1 %v1796_v16  ;;  %v1797_v20 = vld [vmem:[%s2571_s4 + $0x30] sm:$0xff]   ;;  %v1793_v21 = vld [vmem:[%s2569_s2 + $0x8] sm:$0xff]   ;;  %v2339_v23 = vld [vmem:[#allocation2] sm:$0xff]  ;;  %v166_v24 = vmul.f32 0.1, %v164_v17 }
  0x7c   :  { %1602 = vmatprep.subr.bf16.mxu0 %v1784_v5  ;;  %v169_v19 = vadd.f32 %v167_v15, %v2320_v12  ;;  %1680 = vmatprep.subr.bf16.mxu1 %v2163_v0  ;;  %v1794_v25 = vld [vmem:[%s2569_s2 + $0x40] sm:$0xff]   ;;  %v1798_v26 = vld [vmem:[%s2571_s4 + $0x28] sm:$0xff]   ;;  %v1800_v31 = vld [vmem:[%s2571_s4 + $0x18] sm:$0xff]   ;;  %p2083_p6 = por %p2082_p5, %p2081_p4 }
  0x7d   :  { %v1795_v27 = vld [vmem:[%s2569_s2] sm:$0xff]   ;;  %v168_v28 = vadd.f32 %v166_v24, %v2339_v23  ;;  %v1801_v32 = vld [vmem:[%s2571_s4 + $0x10] sm:$0xff]   ;;  %v1802_v33 = vld [vmem:[%s2571_s4 + $0x8] sm:$0xff]  }
  0x7e   :  { %v171_v22 = vpack.c.bf16 %v169_v19, %v169_v19  ;;  %v1799_v29 = vld [vmem:[%s2571_s4 + $0x20] sm:$0xff]   ;;  %v1804_v35 = vld [vmem:[%s2573_s6 + $0x18] sm:$0xff]   ;;  %v1805_v36 = vld [vmem:[%s2573_s6 + $0x10] sm:$0xff]   ;;  %p2084_p7 = pnand %p2083_p6, %p2077_p3 }
  0x7f   :  { %1603 = vmatpush3.bf16.msra.mxu0 %v1785_v6  ;;  %1681 = vmatpush3.bf16.msra.mxu1 %v1797_v20  ;;  %v170_v30 = vpack.c.bf16 %v168_v28, %v168_v28  ;;  %v1803_v34 = vld [vmem:[%s2571_s4] sm:$0xff]   ;;  %v1806_v46 = vld [vmem:[%s2573_s6 + $0x8] sm:$0xff]   ;;  %v1830_v15 = vld [vmem:[#allocation14 + $0x4] ss:$24 sps:$4 sm:$0xff]  }
  0x80   :  { %1604 = vmatprep.subr.bf16.mxu0 %v1786_v7  ;;  %339 = vmatprep.mubr.bf16.mxu0 %v171_v22  ;;  %v2386_v38 = vld [vmem:[#allocation7] ss:$0 sm:$0xff]  ;;  %v1808_v48 = vld [vmem:[#allocation11 + $0x8] sm:$0xff]   ;;  %v2399_v49 = vld [vmem:[#allocation8] ss:$0 sm:$0xff] }
  0x81   :  { %1682 = vmatprep.subr.bf16.mxu1 %v2163_v0  ;;  %v1807_v47 = vld [vmem:[%s2573_s6] sm:$0xff]   ;;  %v1813_v59 = vld [vmem:[#allocation14 + $0x98] ss:$24 sps:$4 sm:$0xff]   ;;  %v1815_v60 = vld [vmem:[#allocation14 + $0x9c] ss:$24 sps:$4 sm:$0xff]  }
  0x82   :  { %v1809_v57 = vld [vmem:[#allocation11] sm:$0xff]   ;;  %v1819_v62 = vld [vmem:[#allocation14 + $0x68] ss:$24 sps:$4 sm:$0xff]   ;;  %v2403_v2 = vld [vmem:[#allocation10] ss:$0 sm:$0xff] }
  0x83   :  { %1605 = vmatpush3.bf16.msra.mxu0 %v1787_v8  ;;  %1683 = vmatpush3.bf16.msra.mxu1 %v1798_v26  ;;  %v1812_v58 = vld [vmem:[#allocation14 + $0x94] ss:$24 sps:$4 sm:$0xff]   ;;  %v1825_v1 = vld [vmem:[#allocation14 + $0x38] ss:$24 sps:$4 sm:$0xff]   ;;  %v1818_v8 = vld [vmem:[#allocation14 + $0x64] ss:$24 sps:$4 sm:$0xff]  }
  0x84   :  { %1606 = vmatprep.subr.bf16.mxu0 %v1788_v9  ;;  %1684 = vmatprep.subr.bf16.mxu1 %v2163_v0  ;;  %v1821_v61 = vld [vmem:[#allocation14 + $0x6c] ss:$24 sps:$4 sm:$0xff]   ;;  %v1827_v63 = vld [vmem:[#allocation14 + $0x3c] ss:$24 sps:$4 sm:$0xff]   ;;  %v1810_v6 = vld [vmem:[#allocation14 + $0x90] ss:$24 sps:$4 sm:$0xff]  }
  0x85   :  { %v1824_v13 = vld [vmem:[#allocation14 + $0x34] ss:$24 sps:$4 sm:$0xff]   ;;  %v1828_v17 = vld [vmem:[#allocation14] ss:$24 sps:$4 sm:$0xff]   ;;  %v1836_v19 = vld [vmem:[#allocation14 + $0xa4] ss:$24 sps:$4 sm:$0xff]  }
  0x86   :  { %v1833_v16 = vld [vmem:[#allocation14 + $0xc] ss:$24 sps:$4 sm:$0xff]   ;;  %v1531_v22 = vld [vmem:[#allocation13] ss:$0 sm:$0xff] }
  0x87   :  { %1607 = vmatpush3.bf16.msra.mxu0 %v1789_v10  ;;  %1685 = vmatpush3.bf16.msra.mxu1 %v1799_v29  ;;  %v1837_v20 = vld [vmem:[%s2569_s2 + $0x78] sm:$0xff]  }
  0x88   :  { %1608 = vmatprep.subr.bf16.mxu0 %v1790_v11  ;;  %1686 = vmatprep.subr.bf16.mxu1 %v2163_v0  ;;  %v1816_v11 = vld [vmem:[#allocation14 + $0x60] ss:$24 sps:$4 sm:$0xff]  }
  0x89   :  { %v1834_v29 = vld [vmem:[#allocation14 + $0xa0] ss:$24 sps:$4 sm:$0xff]  }
  0x8b   :  { %1609 = vmatpush3.bf16.msra.mxu0 %v1791_v14  ;;  %1687 = vmatpush3.bf16.msra.mxu1 %v1800_v31  ;;  %v1822_v14 = vld [vmem:[#allocation14 + $0x30] ss:$24 sps:$4 sm:$0xff]  }
  0x8c   :  { %1610 = vmatprep.subr.bf16.mxu0 %v1792_v18  ;;  %1688 = vmatprep.subr.bf16.mxu1 %v2163_v0  ;;  %v1831_v18 = vld [vmem:[#allocation14 + $0x8] ss:$24 sps:$4 sm:$0xff]  }
  0x8f   :  { %1611 = vmatpush3.bf16.msra.mxu0 %v1793_v21  ;;  %1689 = vmatpush3.bf16.msra.mxu1 %v1801_v32  ;;  %v2165_v21 = vmov 0   ;;  %v1841_v32 = vld [vmem:[#allocation14 + $0x74] ss:$24 sps:$4 sm:$0xff]  }
  0x90   :  { %1612 = vmatprep.subr.bf16.mxu0 %v1794_v25  ;;  %1690 = vmatprep.subr.bf16.mxu1 %v2163_v0 }
  0x93   :  { %1613 = vmatpush3.bf16.msra.mxu0 %v1795_v27  ;;  %1691 = vmatpush3.bf16.msra.mxu1 %v1802_v33  ;;  %v1842_v33 = vld [vmem:[%s2569_s2 + $0x70] sm:$0xff]  }
  0x94   :  { %1698 = vmatprep.subr.bf16.mxu0 %v2163_v0  ;;  %1692 = vmatprep.subr.bf16.mxu1 %v2163_v0 }
  0x96   :  { %340 = vmatmul.mubr.bf16.vlgmr.msra.gmra.mxu0 %v170_v30  ;;  %v1838_v30 = vld [vmem:[%s2569_s2 + $0x38] sm:$0xff]  }
  0x97   :  { %1693 = vmatpush3.bf16.msra.mxu1 %v1803_v34  ;;  %1706 = vmatprep.mubr.msk.bf16.mxu0 %vm2164_vm0, %v2163_v0  ;;  %v984_v34 = vpack.c.bf16 %v2320_v12, %v2320_v12  ;;  %v1844_v12 = vld [vmem:[#allocation14 + $0x40] ss:$24 sps:$4 sm:$0xff]  }
  0x98   :  { %1710 = vmatprep.subr.bf16.mxu1 %v2163_v0  ;;  %1699 = vmatpush3.bf16.msra.mxu0 %v1804_v35 }
  0x99   :  { %1700 = vmatprep.subr.bf16.mxu0 %v2163_v0 }
  0x9c   :  { %1701 = vmatpush3.bf16.msra.mxu0 %v1805_v36  ;;  %v1839_v36 = vld [vmem:[#allocation14 + $0x70] ss:$24 sps:$4 sm:$0xff]  }
  0x9d   :  { %1702 = vmatprep.subr.bf16.mxu0 %v2163_v0 }
  0xa0   :  { %1703 = vmatpush3.bf16.msra.mxu0 %v1806_v46  ;;  %v1854_v46 = vld [vmem:[%s2569_s2 + $0x58] sm:$0xff]  }
  0xa1   :  { %1704 = vmatprep.subr.bf16.mxu0 %v2163_v0 }
  0xa4   :  { %1705 = vmatpush3.bf16.msra.mxu0 %v1807_v47  ;;  %v1855_v47 = vld [vmem:[%s2569_s2 + $0x18] sm:$0xff]  }
  0xa5   :  { %843 = vmatprep.subr.bf16.mxu0 %v1815_v60  ;;  %v1867_v60 = vld [vmem:[%s2571_s4 + $0x10] sm:$0xff]  }
 0x156   :  { %v1614_v37 = vpop.f32.mrf.mxu0 }
 0x158   :  { %v1615_v39 = vpop.f32.mrf.mxu0 }
 0x159   :  { %v1616_v40 = vadd.f32 %v1615_v39, %v1614_v37  ;;  %v1843_v37 = vld [vmem:[%s2569_s2 + $0x30] sm:$0xff]  }
 0x15a   :  { %v1617_v41 = vpop.f32.mrf.mxu0  ;;  %v1846_v39 = vld [vmem:[#allocation14 + $0x44] ss:$24 sps:$4 sm:$0xff]  }
 0x15b   :  { %v342_v42 = vadd.f32 %v1616_v40, %v2386_v38  ;;  %v1847_v40 = vld [vmem:[%s2569_s2 + $0x68] sm:$0xff]  }
 0x15c   :  { %v1618_v43 = vpop.f32.mrf.mxu0  ;;  %v1848_v41 = vld [vmem:[%s2569_s2 + $0x28] sm:$0xff]  }
 0x15d   :  { %v347_v44 = vmax.f32 %v342_v42, 0.0  ;;  %v1851_v42 = vld [vmem:[#allocation14 + $0x14] ss:$24 sps:$4 sm:$0xff]  }
 0x15e   :  { %v1852_v43 = vld [vmem:[%s2569_s2 + $0x60] sm:$0xff]  }
 0x15f   :  { %v348_v45 = vpack.c.bf16 %v347_v44, %v347_v44  ;;  %v1849_v44 = vld [vmem:[#allocation14 + $0x10] ss:$24 sps:$4 sm:$0xff]  }
 0x161   :  { %1695 = vmatmul.mubr.bf16.vlgmr.msra.gmra.mxu1 %v348_v45  ;;  %v1853_v45 = vld [vmem:[%s2569_s2 + $0x20] sm:$0xff]  }
 0x162   :  { %1714 = vmatprep.mubr.msk.bf16.mxu1 %vm2164_vm0, %v2163_v0  ;;  %1711 = vmatpush3.bf16.msra.mxu1 %v1808_v48  ;;  %v1856_v48 = vld [vmem:[%s2569_s2 + $0x50] sm:$0xff]  }
 0x163   :  { %1712 = vmatprep.subr.bf16.mxu1 %v2163_v0 }
 0x166   :  { %1713 = vmatpush3.bf16.msra.mxu1 %v1809_v57  ;;  %v1863_v57 = vld [vmem:[%s2571_s4 + $0x30] sm:$0xff]  }
 0x167   :  { %802 = vmatprep.subr.bf16.mxu1 %v1812_v58  ;;  %v1865_v58 = vld [vmem:[%s2571_s4 + $0x20] sm:$0xff]  }
 0x221   :  { %v454_v50 = vpop.f32.mrf.mxu1 }
 0x222   :  { %v455_v51 = vadd.f32 %v2399_v49, %v454_v50  ;;  %v1857_v50 = vld [vmem:[%s2569_s2 + $0x10] sm:$0xff]  }
 0x223   :  { %v1696_v52 = vpop.f32.mrf.mxu1 }
 0x224   :  { %v460_v53 = vmax.f32 %v455_v51, 0.0  ;;  %v1858_v51 = vld [vmem:[%s2569_s2 + $0x48] sm:$0xff]  }
 0x225   :  { %v457_v54 = vpop.f32.mrf.mxu1  ;;  %v1859_v52 = vld [vmem:[%s2569_s2 + $0x8] sm:$0xff]  }
 0x226   :  { %v461_v55 = vpack.c.bf16 %v460_v53, %v460_v53  ;;  %v1860_v53 = vld [vmem:[%s2569_s2 + $0x40] sm:$0xff]  }
 0x227   :  { %v1697_v56 = vpop.f32.mrf.mxu1  ;;  %v1861_v54 = vld [vmem:[%s2569_s2] sm:$0xff]  }
 0x228   :  { %1707 = vmatmul.mubr.msk.bf16.vlgmr.msra.gmra.mxu0 %vm501_vm1, %v461_v55  ;;  %v983_v55 = vpack.c.bf16 %v2339_v23, %v2339_v23  ;;  %v1862_v56 = vld [vmem:[%s2571_s4 + $0x38] sm:$0xff]   ;;  %v1864_v23 = vld [vmem:[%s2571_s4 + $0x28] sm:$0xff]  }
 0x229   :  { %844 = vmatpush1.bf16.msra.mxu0 %v1813_v59  ;;  %867 = vmatprep.mubr.bf16.mxu0 %v2165_v21  ;;  %v1866_v59 = vld [vmem:[%s2571_s4 + $0x18] sm:$0xff]  }
 0x22a   :  { %845 = vmatprep.subr.bf16.mxu0 %v1821_v61  ;;  %v1868_v61 = vld [vmem:[%s2571_s4 + $0x8] sm:$0xff]  }
 0x22d   :  { %846 = vmatpush1.bf16.msra.mxu0 %v1819_v62  ;;  %v1869_v62 = vld [vmem:[%s2571_s4] sm:$0xff]  }
 0x22e   :  { %847 = vmatprep.subr.bf16.mxu0 %v1827_v63  ;;  %v1870_v63 = vld [vmem:[%s2573_s6 + $0x18] sm:$0xff]  }
 0x231   :  { %848 = vmatpush1.bf16.msra.mxu0 %v1825_v1  ;;  %v1871_v1 = vld [vmem:[%s2573_s6 + $0x10] sm:$0xff]  }
 0x232   :  { %849 = vmatprep.subr.bf16.mxu0 %v1833_v16 }
 0x235   :  { %850 = vmatpush1.bf16.msra.mxu0 %v1831_v18 }
 0x236   :  { %1637 = vmatprep.subr.bf16.mxu0 %v1837_v20 }
 0x2e8   :  { %v539_v3 = vpop.f32.mrf.mxu0 }
 0x2e9   :  { %v540_v4 = vadd.f32 %v2403_v2, %v539_v3  ;;  %v641_v3 = vlaneseq }
 0x2ea   :  { %v1708_v5 = vpop.f32.mrf.mxu0 }
 0x2eb   :  { %v545_v7 = vpack.c.bf16 %v540_v4, %v540_v4  ;;  %v642_v4 = vshrl.u32 %v641_v3, 7 }
 0x2ec   :  { %v542_v9 = vpop.f32.mrf.mxu0 }
 0x2ed   :  { %1715 = vmatmul.mubr.msk.bf16.vlgmr.msra.gmra.mxu1 %vm569_vm2, %v545_v7  ;;  %v643_v5 = vsub.s32 0, %v642_v4  ;;  %v639_v7 = vld [vmem:[#allocation16] sm:$0x3f]  ;;  %v655_v9 = vsub.s32 3, %v642_v4 }
 0x2ee   :  { %v1709_v10 = vpop.f32.mrf.mxu0  ;;  %803 = vmatpush1.bf16.msra.mxu1 %v1810_v6  ;;  %826 = vmatprep.mubr.bf16.mxu1 %v2165_v21  ;;  %v651_v6 = vsub.s32 2, %v642_v4 }
 0x2ef   :  { %804 = vmatprep.subr.bf16.mxu1 %v1818_v8  ;;  %v647_v8 = vsub.s32 1, %v642_v4  ;;  %v644_v10 = vrot.slane %v639_v7, %v643_v5  ;;  %v656_v16 = vrot.slane %v639_v7, %v655_v9 }
 0x2f2   :  { %805 = vmatpush1.bf16.msra.mxu1 %v1816_v11  ;;  %v652_v11 = vrot.slane %v639_v7, %v651_v6 }
 0x2f3   :  { %806 = vmatprep.subr.bf16.mxu1 %v1824_v13  ;;  %v648_v13 = vrot.slane %v639_v7, %v647_v8 }
 0x2f6   :  { %807 = vmatpush1.bf16.msra.mxu1 %v1822_v14 }
 0x2f7   :  { %808 = vmatprep.subr.bf16.mxu1 %v1830_v15 }
 0x2fa   :  { %809 = vmatpush1.bf16.msra.mxu1 %v1828_v17 }
 0x2fb   :  { %884 = vmatprep.subr.bf16.mxu1 %v1836_v19 }
 0x3ad   :  { %v607_v24 = vpop.f32.mrf.mxu1 }
 0x3ae   :  { %v608_v25 = vadd.f32 %v1531_v22, %v607_v24 }
 0x3af   :  { %v1716_v26 = vpop.f32.mrf.mxu1 }
 0x3b0   :  { %v613_v27 = vmax.f32 %v608_v25, 0.0 }
 0x3b1   :  { %v610_v28 = vpop.f32.mrf.mxu1 }
 0x3b2   :  { %v614_v31 = vpack.c.bf16 %v613_v27, %v613_v27 }
 0x3b3   :  { %v1717_v35 = vpop.f32.mrf.mxu1 }
 0x3b4   :  { %1559 = vmatmul.mubr.msk.bf16.vlgmr.msra.gmra.mxu1 %vm501_vm1, %v614_v31  ;;  %1560 = vmatmul.mubr.msk.bf16.vlgmr.msra.gmra.mxu0 %vm501_vm1, %v614_v31  ;;  %v659_v35 = vsub.s32 4, %v642_v4 }
 0x3b5   :  { %885 = vmatpush1.bf16.msra.mxu1 %v1834_v29  ;;  %1638 = vmatpush3.bf16.msra.mxu0 %v1838_v30 }
 0x3b6   :  { %886 = vmatprep.subr.bf16.mxu1 %v1841_v32  ;;  %1639 = vmatprep.subr.bf16.mxu0 %v1842_v33 }
 0x3b7   :  { %908 = vmatprep.mubr.bf16.mxu1 %v2165_v21  ;;  %1152 = vmatprep.mubr.bf16.mxu0 %v984_v34 }
 0x3b9   :  { %887 = vmatpush1.bf16.msra.mxu1 %v1839_v36  ;;  %1640 = vmatpush3.bf16.msra.mxu0 %v1843_v37  ;;  %v663_v37 = vsub.s32 5, %v642_v4 }
 0x3ba   :  { %888 = vmatprep.subr.bf16.mxu1 %v1846_v39  ;;  %1641 = vmatprep.subr.bf16.mxu0 %v1847_v40  ;;  %v660_v39 = vrot.slane %v639_v7, %v659_v35 }
 0x3bb   :  { %v664_v40 = vrot.slane %v639_v7, %v663_v37 }
 0x3bd   :  { %889 = vmatpush1.bf16.msra.mxu1 %v1844_v12  ;;  %1642 = vmatpush3.bf16.msra.mxu0 %v1848_v41 }
 0x3be   :  { %890 = vmatprep.subr.bf16.mxu1 %v1851_v42  ;;  %1643 = vmatprep.subr.bf16.mxu0 %v1852_v43 }
 0x3c1   :  { %891 = vmatpush1.bf16.msra.mxu1 %v1849_v44  ;;  %1644 = vmatpush3.bf16.msra.mxu0 %v1853_v45 }
 0x3c2   :  { %1645 = vmatprep.subr.bf16.mxu0 %v1854_v46  ;;  %1718 = vmatprep.subr.bf16.mxu1 %v2163_v0 }
 0x3c4   :  { %1561 = vmatmul.mubr.msk.bf16.vlgmr.msra.gmra.mxu1 %vm501_vm1, %v614_v31 }
 0x3c5   :  { %1646 = vmatpush3.bf16.msra.mxu0 %v1855_v47  ;;  %1734 = vmatprep.mubr.msk.bf16.mxu1 %vm2164_vm0, %v2163_v0 }
 0x3c6   :  { %1647 = vmatprep.subr.bf16.mxu0 %v1856_v48  ;;  %1719 = vmatpush3.bf16.msra.mxu1 %v1862_v56 }
 0x3c7   :  { %1720 = vmatprep.subr.bf16.mxu1 %v2163_v0 }
 0x3c9   :  { %1648 = vmatpush3.bf16.msra.mxu0 %v1857_v50 }
 0x3ca   :  { %1649 = vmatprep.subr.bf16.mxu0 %v1858_v51  ;;  %1721 = vmatpush3.bf16.msra.mxu1 %v1863_v57 }
 0x3cb   :  { %1722 = vmatprep.subr.bf16.mxu1 %v2163_v0 }
 0x3cd   :  { %1650 = vmatpush3.bf16.msra.mxu0 %v1859_v52 }
 0x3ce   :  { %1651 = vmatprep.subr.bf16.mxu0 %v1860_v53  ;;  %1723 = vmatpush3.bf16.msra.mxu1 %v1864_v23 }
 0x3cf   :  { %1724 = vmatprep.subr.bf16.mxu1 %v2163_v0 }
 0x3d1   :  { %1652 = vmatpush3.bf16.msra.mxu0 %v1861_v54 }
 0x3d2   :  { %1738 = vmatprep.subr.bf16.mxu0 %v2163_v0  ;;  %1725 = vmatpush3.bf16.msra.mxu1 %v1865_v58 }
 0x3d3   :  { %1726 = vmatprep.subr.bf16.mxu1 %v2163_v0 }
 0x3d4   :  { %1153 = vmatmul.mubr.bf16.vlgmr.msra.gmra.mxu0 %v983_v55 }
 0x3d5   :  { %1746 = vmatprep.mubr.msk.bf16.mxu0 %vm2164_vm0, %v2163_v0  ;;  %1739 = vmatpush3.bf16.msra.mxu0 %v1870_v63 }
 0x3d6   :  { %1727 = vmatpush3.bf16.msra.mxu1 %v1866_v59  ;;  %1740 = vmatprep.subr.bf16.mxu0 %v2163_v0 }
 0x3d7   :  { %1728 = vmatprep.subr.bf16.mxu1 %v2163_v0 }
 0x3d9   :  { %1741 = vmatpush3.bf16.msra.mxu0 %v1871_v1 }
 0x3da   :  { %1729 = vmatpush3.bf16.msra.mxu1 %v1867_v60  ;;  %1742 = vmatprep.subr.bf16.mxu0 %v2163_v0 }
 0x3db   :  { %1730 = vmatprep.subr.bf16.mxu1 %v2163_v0 }
 0x3de   :  { %1731 = vmatpush3.bf16.msra.mxu1 %v1868_v61 }
 0x3df   :  { %1732 = vmatprep.subr.bf16.mxu1 %v2163_v0 }
 0x3e2   :  { %1733 = vmatpush3.bf16.msra.mxu1 %v1869_v62 }
 0x3e3   :  { %1750 = vmatprep.subr.mxu1 %v2163_v0 }
 0x474   :  { %v828_v14 = vpop.f32.mrf.mxu1  ;;  %v869_v15 = vpop.f32.mrf.mxu0 }
 0x475   :  { %v829_v17 = vadd.f32 %v828_v14, %v644_v10  ;;  %v2508_v18 = vadd.f32 %v869_v15, %v652_v11 }
 0x476   :  { %v830_v19 = vpop.f32.mrf.mxu1  ;;  %v871_v20 = vpop.f32.mrf.mxu0 }
 0x477   :  { %v917_v21 = vmul.f32 1.442695, %v829_v17  ;;  %v933_v22 = vand.u32 2147483647, %v2508_v18  ;;  %v831_v24 = vadd.f32 %v830_v19, %v648_v13  ;;  %v2511_v25 = vadd.f32 %v871_v20, %v656_v16 }
 0x478   :  { %v832_v26 = vpop.f32.mrf.mxu1  ;;  %v873_v27 = vpop.f32.mrf.mxu0  ;;  %v927_v17 = vmax.f32 %v2508_v18, 0.0  ;;  %vm929_vm5 = vcmp.ne.f32.partialorder %v2508_v18, %v2508_v18 }
 0x479   :  { %1874 = vpow2.f32 %v917_v21  ;;  %v935_v28 = vsub.f32 0.0, %v933_v22  ;;  %v919_v29 = vmul.f32 1.442695, %v831_v24  ;;  %v934_v30 = vand.u32 2147483647, %v2511_v25 }
 0x47a   :  { %v833_v31 = vpop.f32.mrf.mxu1  ;;  %v874_v32 = vpop.f32.mrf.mxu0  ;;  %v928_v27 = vmax.f32 %v2511_v25, 0.0  ;;  %vm930_vm6 = vcmp.ne.f32.partialorder %v2511_v25, %v2511_v25 }
 0x47b   :  { %v937_v33 = vmul.f32 1.442695, %v935_v28  ;;  %1876 = vpow2.f32 %v919_v29  ;;  %v936_v34 = vsub.f32 0.0, %v934_v30 }
 0x47d   :  { %1878 = vpow2.f32 %v937_v33  ;;  %v939_v36 = vmul.f32 1.442695, %v936_v34 }
 0x47f   :  { %1880 = vpow2.f32 %v939_v36 }
 0x484   :  { %v910_v12 = vpop.f32.mrf.mxu1 }
 0x485   :  { %v911_v41 = vadd.f32 %v910_v12, %v660_v39 }
 0x486   :  { %v1875_v42 = vpop.eup %1874  ;;  %v912_v43 = vpop.f32.mrf.mxu1 }
 0x487   :  { %v921_v44 = vmax.f32 %v1875_v42, 1e-05  ;;  %v1562_v45 = vmul.f32 -1.442695, %v911_v41  ;;  %v913_v46 = vadd.f32 %v912_v43, %v664_v40 }
 0x488   :  { %v1877_v47 = vpop.eup %1876  ;;  %v914_v48 = vpop.f32.mrf.mxu1 }
 0x489   :  { %v922_v50 = vmax.f32 %v1877_v47, 1e-05  ;;  %1882 = vpow2.f32 %v1562_v45  ;;  %v1563_v51 = vmul.f32 -1.442695, %v913_v46  ;;  %v923_v52 = vmin.f32 %v921_v44, 1000000.0 }
 0x48a   :  { %v1879_v53 = vpop.eup %1878  ;;  %v915_v54 = vpop.f32.mrf.mxu1 }
 0x48b   :  { %v941_v55 = vadd.f32 1.0, %v1879_v53  ;;  %1884 = vpow2.f32 %v1563_v51  ;;  %925 = vst [vmem:[#allocation17] sm:$0xff] %v923_v52  ;;  %v924_v56 = vmin.f32 %v922_v50, 1000000.0  ;;  %v944_v58 = vmul.f32 -0.5, %v1879_v53  ;;  %v1366_v52 = vld [vmem:[%s2579_s12 + $0x10] sm:$0xff] }
 0x48c   :  { %v1881_v57 = vpop.eup %1880  ;;  %v947_v5 = vand.u32 2147483647, %v1879_v53 }
 0x48d   :  { %1886 = vlog2.f32 %v941_v55  ;;  %v950_v23 = vadd.f32 1.0, %v1881_v57  ;;  %926 = vst [vmem:[#allocation17 + $0x8] sm:$0xff] %v924_v56  ;;  %v953_v61 = vmul.f32 -0.5, %v1881_v57  ;;  %v945_v63 = vadd.f32 1.0, %v944_v58 }
 0x48e   :  { %v956_v11 = vand.u32 2147483647, %v1881_v57  ;;  %vm948_vm3 = vcmp.lt.f32.partialorder %v947_v5, 0.0004427343 }
 0x48f   :  { %1888 = vlog2.f32 %v950_v23  ;;  %v954_v10 = vadd.f32 1.0, %v953_v61  ;;  %v946_v15 = vmul.f32 %v1879_v53, %v945_v63  ;;  %v1364_v53 = vld [vmem:[%s2579_s12] sm:$0xff] }
 0x490   :  { %vm957_vm4 = vcmp.lt.f32.partialorder %v956_v11, 0.0004427343 }
 0x491   :  { %v955_v26 = vmul.f32 %v1881_v57, %v954_v10 }
 0x494   :  { %v1653_v59 = vpop.f32.mrf.mxu0 }
 0x496   :  { %v1883_v60 = vpop.eup %1882  ;;  %v1654_v62 = vpop.f32.mrf.mxu0 }
 0x497   :  { %v975_v1 = vadd.f32 1.0, %v1883_v60  ;;  %v1655_v3 = vadd.f32 %v1654_v62, %v1653_v59 }
 0x498   :  { %v1885_v4 = vpop.eup %1884  ;;  %v1656_v6 = vpop.f32.mrf.mxu0 }
 0x499   :  { %1890 = vrcp.f32 %v975_v1  ;;  %v976_v7 = vadd.f32 1.0, %v1885_v4  ;;  %v1155_v8 = vadd.f32 %v1655_v3, %v2386_v38 }
 0x49a   :  { %v1887_v9 = vpop.eup %1886  ;;  %v1657_v13 = vpop.f32.mrf.mxu0 }
 0x49b   :  { %v943_v14 = vmul.f32 0.6931472, %v1887_v9  ;;  %1892 = vrcp.f32 %v976_v7  ;;  %v1160_v16 = vmax.f32 %v1155_v8, 0.0 }
 0x49c   :  { %v1889_v19 = vpop.eup %1888 }
 0x49d   :  { %v949_v20 = vsel %vm948_vm3, %v946_v15, %v943_v14  ;;  %v1161_v21 = vpack.c.bf16 %v1160_v16, %v1160_v16  ;;  %v952_v24 = vmul.f32 0.6931472, %v1889_v19 }
 0x49e   :  { %v959_v22 = vadd.f32 %v949_v20, %v927_v17 }
 0x49f   :  { %1735 = vmatmul.mubr.bf16.vlgmr.msra.gmra.mxu1 %v1161_v21  ;;  %v958_v38 = vsel %vm957_vm4, %v955_v26, %v952_v24 }
 0x4a0   :  { %1758 = vmatprep.mubr.msk.f32.mxu1 %vm2164_vm0, %v2163_v0  ;;  %v961_v28 = vsel %vm929_vm5, %v2508_v18, %v959_v22  ;;  %v960_v29 = vadd.f32 %v958_v38, %v928_v27  ;;  %v1872_v18 = vld [vmem:[%s2573_s6 + $0x8] sm:$0xff]  }
 0x4a1   :  { %v963_v30 = vmax.f32 %v961_v28, 0.0001  ;;  %1743 = vmatpush3.bf16.msra.mxu0 %v1872_v18 }
 0x4a2   :  { %v962_v31 = vsel %vm930_vm6, %v2511_v25, %v960_v29  ;;  %1744 = vmatprep.subr.bf16.mxu0 %v2163_v0  ;;  %v1873_v25 = vld [vmem:[%s2573_s6] sm:$0xff]  }
 0x4a3   :  { %v965_v32 = vmin.f32 %v963_v30, 10000.0  ;;  %v964_v33 = vmax.f32 %v962_v31, 0.0001 }
 0x4a5   :  { %967 = vst [vmem:[#allocation18] sm:$0xff] %v965_v32  ;;  %v966_v35 = vmin.f32 %v964_v33, 10000.0  ;;  %1745 = vmatpush3.bf16.msra.mxu0 %v1873_v25 }
 0x4a6   :  { %v1891_v34 = vpop.eup %1890 }
 0x4a7   :  { %981 = vst [vmem:[#allocation20] sm:$0xff] %v1891_v34  ;;  %968 = vst [vmem:[#allocation18 + $0x8] sm:$0xff] %v966_v35 }
 0x4a8   :  { %v1893_v36 = vpop.eup %1892 }
 0x4a9   :  { %982 = vst [vmem:[#allocation20 + $0x8] sm:$0xff] %v1893_v36 }
 0x55f   :  { %v1267_v37 = vpop.f32.mrf.mxu1 }
 0x560   :  { %v1268_v39 = vadd.f32 %v2399_v49, %v1267_v37  ;;  %v1367_v49 = vld [vmem:[%s2579_s12 + $0x18] sm:$0xff] }
 0x561   :  { %v1736_v40 = vpop.f32.mrf.mxu1  ;;  %1751 = vmatpush3.msra.mxu1 %v1367_v49 }
 0x562   :  { %v1273_v12 = vmax.f32 %v1268_v39, 0.0  ;;  %1752 = vmatprep.subr.mxu1 %v2163_v0 }
 0x563   :  { %v1270_v41 = vpop.f32.mrf.mxu1  ;;  %1753 = vmatpush3.msra.mxu1 %v1366_v52 }
 0x564   :  { %v1274_v42 = vpack.c.bf16 %v1273_v12, %v1273_v12  ;;  %1754 = vmatprep.subr.mxu1 %v2163_v0 }
 0x565   :  { %v1737_v43 = vpop.f32.mrf.mxu1 }
 0x566   :  { %1747 = vmatmul.mubr.msk.bf16.vlgmr.msra.gmra.mxu0 %vm501_vm1, %v1274_v42 }
 0x626   :  { %v1351_v44 = vpop.f32.mrf.mxu0 }
 0x627   :  { %v1352_v45 = vadd.f32 %v2403_v2, %v1351_v44  ;;  %v1365_v2 = vld [vmem:[%s2579_s12 + $0x8] sm:$0xff] }
 0x628   :  { %v1748_v46 = vpop.f32.mrf.mxu0  ;;  %1755 = vmatpush3.msra.mxu1 %v1365_v2 }
 0x629   :  { %v1357_v47 = vmul.f32 %v1352_v45, %v1352_v45  ;;  %1756 = vmatprep.subr.mxu1 %v2163_v0 }
 0x62a   :  { %v1354_v48 = vpop.f32.mrf.mxu0  ;;  %1757 = vmatpush3.msra.mxu1 %v1364_v53 }
 0x62b   :  { %v1358_v50 = vsel %vm569_vm2, %v1357_v47, 0.0 }
 0x62c   :  { %v1749_v51 = vpop.f32.mrf.mxu0  ;;  %1359 = vadd.xlane.f32.xlu0 %v1358_v50 }
 0x6b5   :  { %v1360_v54 = vpop.xlane.xlu0 %1359 }
 0x6b6   :  { %v1361_v55 = vmax.f32 %v1360_v54, 1e-24 }
 0x6b8   :  { %1894 = vrsqrt.f32 %v1361_v55 }
 0x6c5   :  { %v1895_v56 = vpop.eup %1894 }
 0x6c6   :  { %v1363_v57 = vmul.f32 %v1895_v56, %v1352_v45 }
 0x6c8   :  { %1759 = vmatmul.mubr.msk.f32.vlgmr.msra.gmra.mxu1 %vm569_vm2, %v1363_v57 }
 0x6c9   :  { %2087 = shalt.err (!%p2084_p7)
}
 0x6ca   :  { %1470 = dma.vmem_to_hbm [thread:$0]  %s1468_s27, 256, %s2583_s16, [#allocation19]  }
 0x6cb   :  { %s2096_s20 = scalar_lea.vmem %s1458_s18, 256  ;;  %p2101_p9 = scmp.lt.s32.totalorder %s1458_s18, %s1458_s18 }
 0x6cc   :  { %p2097_p8 = scmp.ne.s32.totalorder %s1458_s18, %s2096_s20  ;;  %p2102_p10 = scmp.lt.s32.totalorder %s2096_s20, %s2096_s20 }
 0x6ce   :  { %p2103_p11 = por %p2102_p10, %p2101_p9 }
 0x6d0   :  { %p2104_p12 = pnand %p2103_p11, %p2097_p8 }
 0x6d2   :  { %2107 = shalt.err (!%p2104_p12)
}
 0x6d3   :  { %1460 = dma.vmem_to_hbm [thread:$0]  %s1458_s18, 256, %s2582_s15, [#allocation4]  }
 0x6d4   :  { %s2168_s8 = smov [#allocation20]  }
 0x6d5   :  { %s1477_s22 = sshll.u32 %s2168_s8, 4  ;;  %s1478_s22 = int_to_ptr.vmem [resolvable:$true] %s1477_s22 }
 0x6d6   :  { %s2116_s23 = scalar_lea.vmem %s1478_s22, 256  ;;  %p2121_p0 = scmp.lt.s32.totalorder %s1478_s22, %s1478_s22 }
 0x6d7   :  { %p2117_p13 = scmp.ne.s32.totalorder %s1478_s22, %s2116_s23  ;;  %p2122_p1 = scmp.lt.s32.totalorder %s2116_s23, %s2116_s23 }
 0x6d9   :  { %p2123_p2 = por %p2122_p1, %p2121_p0 }
 0x6db   :  { %p2124_p3 = pnand %p2123_p2, %p2117_p13 }
 0x6dd   :  { %2127 = shalt.err (!%p2124_p3)
}
 0x6de   :  { %1480 = dma.vmem_to_hbm [thread:$0]  %s1478_s22, 256, %s2584_s17, [#allocation19]   ;;  %v1596_v0 = vld [vmem:[%s2580_s13] ss:$0 sm:$0xff] }
 0x788   :  { %v1444_v23 = vpop.f32.mrf.mxu1 }
 0x789   :  { %v1445_v58 = vadd.f32 %v1596_v0, %v1444_v23 }
 0x78a   :  { %v1760_v59 = vpop.f32.mrf.mxu1 }
 0x78b   :  { %1448 = vst [vmem:[%s2581_s14] sm:$0xff] %v1445_v58 }
 0x78c   :  { %2146 = dma.done.wait [#allocation4], 256  }
 0x78d   :  { %2147 = vsyncadd [#allocation4], 4294967040 }
 0x78e   :  { %2148 = dma.done.wait [#allocation19], 512  }
 0x78f   :  { %2149 = vsyncadd [#allocation19], 4294966784 }
 0x790   :  { %1492 = vsyncpa [#allocation3], 1 }
 0x791   :  { %1493 = vsyncpa [#allocation6], 1 }
 0x792   :  { %1494 = vsyncpa [#allocation9], 1 }
 0x793   :  { %1495 = vsyncpa [#allocation12], 1 }
 0x794   :  { %1496 = vsyncpa [#allocation15], 1 }
 0x795   :  { %1497 = vsyncpa [#allocation4], 1 }
 0x796   :  { %1498 = vsyncpa [#allocation19], 1 }

</bundles_post_ra>
